<compile_context>
chip_gen: v6e
topology: v6e:2x2x1
jax: 0.10.0
libtpu: 0.0.40
codegen_flags: <defaults>
</compile_context>

<pallas_src>
import functools

import jax
import jax.numpy as jnp
import numpy as np
from jax.experimental import pallas as pl
from jax.experimental.pallas import tpu as pltpu


def _bsq_kernel(x_ref, wd_ref, bd_ref, wu_ref, bu_ref, o_ref):
    # x_ref : (TM, Epk)   tile of packed input rows
    # wd_ref: (Epk, Cpk)  block-diagonal down-projection weight (VMEM resident)
    # bd_ref: (1, Cpk)    tiled down-projection bias
    # wu_ref: (Cpk, Epk)  block-diagonal up-projection weight (VMEM resident)
    # bu_ref: (1, Epk)    tiled up-projection bias
    # o_ref : (TM, Epk)   packed output tile
    x = x_ref[...]

    # --- encode: down_proj (MXU, f32 accumulate) ---
    h = jnp.dot(x, wd_ref[...], preferred_element_type=jnp.float32) + bd_ref[...]

    # --- encode: sign.  L2 norm omitted: divisor (norm + 1e-6) > 0 preserves
    #     the sign, and diff_sign maps 0 -> +1 either way.
    code = jnp.where(h >= 0, 1.0, -1.0).astype(jnp.float32)

    # --- decode: up_proj (MXU) ---
    out = jnp.dot(code, wu_ref[...], preferred_element_type=jnp.float32) + bu_ref[...]
    o_ref[...] = out.astype(o_ref.dtype)


@functools.partial(jax.jit, static_argnames=("tm",))
def bsq_forward(x, w_down, b_down, w_up, b_up, *, tm=1024):
    """BSQ forward.

    x: (..., E) float32.
    Weights stored pre-transposed: w_down (E, C), w_up (C, E); biases (1, C) / (1, E).
    tm = row tile in *packed* rows (each packed row holds `pack` original rows).
    """
    orig_shape = x.shape
    E = orig_shape[-1]
    C = w_down.shape[1]
    x2 = x.reshape(-1, E)
    M = x2.shape[0]

    # Lane-dense packing: fold `pack` rows of width E into one 128-lane row.
    pack = (128 // E) if (E < 128 and 128 % E == 0) else 1
    Epk = E * pack
    Cpk = C * pack

    # Packed row count, padded so the (sublane-aligned) row tile divides evenly.
    Mpk = -(-M // pack)
    tm_eff = max(8, min(tm, ((Mpk + 7) // 8) * 8))   # 8-aligned row tile
    Mpk_pad = -(-Mpk // tm_eff) * tm_eff
    row_pad = Mpk_pad * pack - M
    if row_pad:
        x2 = jnp.pad(x2, ((0, row_pad), (0, 0)))
    xp = x2.reshape(Mpk_pad, Epk)                    # contiguous row-major pack

    if pack > 1:
        eye = jnp.eye(pack, dtype=w_down.dtype)
        wd = jnp.kron(eye, w_down)                   # (Epk, Cpk) block-diagonal
        wu = jnp.kron(eye, w_up)                     # (Cpk, Epk) block-diagonal
        bd = jnp.tile(b_down, (1, pack))             # (1, Cpk)
        bu = jnp.tile(b_up, (1, pack))               # (1, Epk)
    else:
        wd, wu, bd, bu = w_down, w_up, b_down, b_up

    grid = (Mpk_pad // tm_eff,)
    out = pl.pallas_call(
        _bsq_kernel,
        out_shape=jax.ShapeDtypeStruct((Mpk_pad, Epk), x.dtype),
        grid=grid,
        in_specs=[
            pl.BlockSpec((tm_eff, Epk), lambda i: (i, 0)),   # packed x rows
            pl.BlockSpec((Epk, Cpk), lambda i: (0, 0)),      # w_down (resident)
            pl.BlockSpec((1, Cpk), lambda i: (0, 0)),        # b_down (resident)
            pl.BlockSpec((Cpk, Epk), lambda i: (0, 0)),      # w_up (resident)
            pl.BlockSpec((1, Epk), lambda i: (0, 0)),        # b_up (resident)
        ],
        out_specs=pl.BlockSpec((tm_eff, Epk), lambda i: (i, 0)),
        compiler_params=pltpu.CompilerParams(
            dimension_semantics=("parallel",),
        ),
    )(xp, wd, bd, wu, bu)

    return out.reshape(Mpk_pad * pack, E)[:M].reshape(orig_shape)


def _reference(x, w_down, b_down, w_up, b_up):
    # Faithful to the torch module (keeps the L2 normalization) to prove the
    # sign-preserving simplification inside the kernel is exact.
    h = x @ w_down + b_down
    h = h / (jnp.sqrt(jnp.sum(h * h, axis=-1, keepdims=True)) + 1e-6)
    code = jnp.where(h >= 0, 1.0, -1.0)
    return code @ w_up + b_up


if __name__ == "__main__":
    codebook_bits = 8
    embedding_dim = 32
    B, S = 2, 8  # batch, sequence of embedding vectors

    key = jax.random.PRNGKey(0)
    kx, kwd, kbd, kwu, kbu = jax.random.split(key, 5)

    # Deterministic parameter init mimicking torch.nn.Linear's uniform init.
    bound_d = 1.0 / np.sqrt(embedding_dim)
    bound_u = 1.0 / np.sqrt(codebook_bits)
    # Stored pre-transposed: (in_features, out_features).
    w_down = jax.random.uniform(kwd, (embedding_dim, codebook_bits),
                                jnp.float32, -bound_d, bound_d)
    b_down = jax.random.uniform(kbd, (1, codebook_bits),
                                jnp.float32, -bound_d, bound_d)
    w_up = jax.random.uniform(kwu, (codebook_bits, embedding_dim),
                              jnp.float32, -bound_u, bound_u)
    b_up = jax.random.uniform(kbu, (1, embedding_dim),
                              jnp.float32, -bound_u, bound_u)

    x = jax.random.normal(kx, (B, S, embedding_dim), jnp.float32)

    out = bsq_forward(x, w_down, b_down, w_up, b_up)
    out = jax.block_until_ready(out)

    ref = _reference(x.reshape(-1, embedding_dim), w_down, b_down, w_up, b_up)
    ref = ref.reshape(B, S, embedding_dim)
    np.testing.assert_allclose(np.asarray(out), np.asarray(ref),
                               rtol=1e-5, atol=1e-5)

    # TODO(synk): encode_index/decode_index (integer token packing) and the
    # straight-through gradient are not implemented; forward pass only.
    print("KERNEL_OK")
</pallas_src>

<mosaic_0001>
module attributes {stable_mosaic.version = 11 : i64} {
  func.func @_bsq_kernel(%arg0: i32, %arg1: memref<8x128xf32, #tpu.memory_space<vmem>>, %arg2: memref<128x32xf32, #tpu.memory_space<vmem>>, %arg3: memref<1x32xf32, #tpu.memory_space<vmem>>, %arg4: memref<32x128xf32, #tpu.memory_space<vmem>>, %arg5: memref<1x128xf32, #tpu.memory_space<vmem>>, %arg6: memref<8x128xf32, #tpu.memory_space<vmem>>) attributes {dimension_semantics = [#tpu.dimension_semantics<parallel>], iteration_bounds = array<i64: 1>, scalar_prefetch = 0 : i64, scratch_operands = 0 : i64, tpu.core_type = #tpu.core_type<tc>, window_params = [{transform_indices = @transform_0, window_bounds = array<i64: 8, 128>}, {pipeline_mode = #tpu.pipeline_mode<synchronous>, transform_indices = @transform_1, window_bounds = array<i64: 128, 32>}, {pipeline_mode = #tpu.pipeline_mode<synchronous>, transform_indices = @transform_2, window_bounds = array<i64: 1, 32>}, {pipeline_mode = #tpu.pipeline_mode<synchronous>, transform_indices = @transform_3, window_bounds = array<i64: 32, 128>}, {pipeline_mode = #tpu.pipeline_mode<synchronous>, transform_indices = @transform_4, window_bounds = array<i64: 1, 128>}, {transform_indices = @transform_5, window_bounds = array<i64: 8, 128>}]} {
    %c0 = arith.constant 0 : index
    %c0_0 = arith.constant 0 : index
    %0 = vector.load %arg1[%c0, %c0_0] : memref<8x128xf32, #tpu.memory_space<vmem>>, vector<8x128xf32>
    %c0_1 = arith.constant 0 : index
    %c0_2 = arith.constant 0 : index
    %1 = vector.load %arg2[%c0_1, %c0_2] : memref<128x32xf32, #tpu.memory_space<vmem>>, vector<128x32xf32>
    %cst = arith.constant dense<0.000000e+00> : vector<8x32xf32>
    %2 = tpu.matmul %0, %1, %cst {dimension_numbers = #tpu.dot_dimension_numbers<[1], [0], [0], [1], [0, 0, 1, 1], [], []>} : vector<8x128xf32>, vector<128x32xf32>, vector<8x32xf32> -> vector<8x32xf32>
    %c0_3 = arith.constant 0 : index
    %c0_4 = arith.constant 0 : index
    %3 = vector.load %arg3[%c0_3, %c0_4] : memref<1x32xf32, #tpu.memory_space<vmem>>, vector<1x32xf32>
    %4 = vector.broadcast %3 : vector<1x32xf32> to vector<8x32xf32>
    %5 = arith.addf %2, %4 : vector<8x32xf32>
    %cst_5 = arith.constant 0.000000e+00 : f32
    %6 = vector.broadcast %cst_5 : f32 to vector<8x32xf32>
    %7 = arith.cmpf oge, %5, %6 : vector<8x32xf32>
    %cst_6 = arith.constant 1.000000e+00 : f32
    %cst_7 = arith.constant -1.000000e+00 : f32
    %8 = vector.broadcast %cst_6 : f32 to vector<8x32xf32>
    %9 = vector.broadcast %cst_7 : f32 to vector<8x32xf32>
    %10 = arith.select %7, %8, %9 : vector<8x32xi1>, vector<8x32xf32>
    %c0_8 = arith.constant 0 : index
    %c0_9 = arith.constant 0 : index
    %11 = vector.load %arg4[%c0_8, %c0_9] : memref<32x128xf32, #tpu.memory_space<vmem>>, vector<32x128xf32>
    %cst_10 = arith.constant dense<0.000000e+00> : vector<8x128xf32>
    %12 = tpu.matmul %10, %11, %cst_10 {dimension_numbers = #tpu.dot_dimension_numbers<[1], [0], [0], [1], [0, 0, 1, 1], [], []>} : vector<8x32xf32>, vector<32x128xf32>, vector<8x128xf32> -> vector<8x128xf32>
    %c0_11 = arith.constant 0 : index
    %c0_12 = arith.constant 0 : index
    %13 = vector.load %arg5[%c0_11, %c0_12] : memref<1x128xf32, #tpu.memory_space<vmem>>, vector<1x128xf32>
    %14 = vector.broadcast %13 : vector<1x128xf32> to vector<8x128xf32>
    %15 = arith.addf %12, %14 : vector<8x128xf32>
    %c0_13 = arith.constant 0 : index
    %c0_14 = arith.constant 0 : index
    %16 = vector.load %arg6[%c0_13, %c0_14] : memref<8x128xf32, #tpu.memory_space<vmem>>, vector<8x128xf32>
    tpu.vector_store %arg6[%c0_13, %c0_14], %15 {strides = array<i32>} : memref<8x128xf32, #tpu.memory_space<vmem>>, vector<8x128xf32>,
    return
  }
  func.func @transform_0(%arg0: i32) -> (i32, i32) {
    %c0_i32 = arith.constant 0 : i32
    %c0_i32_0 = arith.constant 0 : i32
    return %arg0, %c0_i32 : i32, i32
  }
  func.func @transform_1(%arg0: i32) -> (i32, i32) {
    %c0_i32 = arith.constant 0 : i32
    %c0_i32_0 = arith.constant 0 : i32
    %c0_i32_1 = arith.constant 0 : i32
    return %c0_i32, %c0_i32_0 : i32, i32
  }
  func.func @transform_2(%arg0: i32) -> (i32, i32) {
    %c0_i32 = arith.constant 0 : i32
    %c0_i32_0 = arith.constant 0 : i32
    %c0_i32_1 = arith.constant 0 : i32
    return %c0_i32, %c0_i32_0 : i32, i32
  }
  func.func @transform_3(%arg0: i32) -> (i32, i32) {
    %c0_i32 = arith.constant 0 : i32
    %c0_i32_0 = arith.constant 0 : i32
    %c0_i32_1 = arith.constant 0 : i32
    return %c0_i32, %c0_i32_0 : i32, i32
  }
  func.func @transform_4(%arg0: i32) -> (i32, i32) {
    %c0_i32 = arith.constant 0 : i32
    %c0_i32_0 = arith.constant 0 : i32
    %c0_i32_1 = arith.constant 0 : i32
    return %c0_i32, %c0_i32_0 : i32, i32
  }
  func.func @transform_5(%arg0: i32) -> (i32, i32) {
    %c0_i32 = arith.constant 0 : i32
    %c0_i32_0 = arith.constant 0 : i32
    return %arg0, %c0_i32 : i32, i32
  }
}

</mosaic_0001>

<bundles_post_ra>
// kernel: bsq_forward.1
= control target key start
LH: loop header
LB: loop body
LE: loop exit
PB: predicated region body
PF: predicated region fallthrough
CT: control target
= control target key end

     0   :  { %v280_v0 = vmov 0.0   ;;  %vm281_vm0 = vmmov 0   ;;  %vm127_vm1 = vcmask 261120   ;;  %v282_v26 = vmov -1.0   ;;  %s407_s1 = inlined_call_operand.vmem [shape: f32[128,32], index: 1, kind: input, shape index: {}]   ;;  %s408_s3 = inlined_call_operand.vmem [shape: f32[32,128], index: 3, kind: input, shape index: {}]   ;;  %s409_s0 = inlined_call_operand.vmem [shape: f32[8,128], index: 0, kind: input, shape index: {}]   ;;  %s410_s2 = inlined_call_operand.vmem [shape: f32[1,32], index: 2, kind: input, shape index: {}]   ;;  %s411_s4 = inlined_call_operand.vmem [shape: f32[1,128], index: 4, kind: input, shape index: {}]   ;;  %s412_s5 = inlined_call_operand.vmem [shape: f32[8,128], index: 5, kind: output, shape index: {}]  }
   0x1   :  { %231 = vmatprep.subr.mxu0 %v280_v0  ;;  %v36_v1 = vld [vmem:[%s407_s1 + $0x78] sm:$0xff]  ;;  %v35_v2 = vld [vmem:[%s407_s1 + $0x70] sm:$0xff]  ;;  %263 = vmatprep.mubr.msk.f32.mxu0 %vm281_vm0, %v280_v0  ;;  %v34_v3 = vld [vmem:[%s407_s1 + $0x68] sm:$0xff] }
   0x2   :  { %232 = vmatpush3.msra.mxu0 %v36_v1  ;;  %266 = vmatprep.subr.mxu1 %v280_v0  ;;  %v33_v4 = vld [vmem:[%s407_s1 + $0x60] sm:$0xff]  ;;  %v119_v5 = vld [vmem:[%s408_s3 + $0x18] sm:$0xff]  ;;  %v31_v7 = vld [vmem:[%s407_s1 + $0x50] sm:$0xff] }
   0x3   :  { %233 = vmatprep.subr.mxu0 %v280_v0  ;;  %274 = vmatprep.mubr.msk.f32.mxu1 %vm281_vm0, %v280_v0  ;;  %v32_v6 = vld [vmem:[%s407_s1 + $0x58] sm:$0xff]  ;;  %v30_v8 = vld [vmem:[%s407_s1 + $0x48] sm:$0xff]  ;;  %v29_v9 = vld [vmem:[%s407_s1 + $0x40] sm:$0xff] }
   0x4   :  { %234 = vmatpush3.msra.mxu0 %v35_v2  ;;  %267 = vmatpush3.msra.mxu1 %v119_v5  ;;  %v28_v10 = vld [vmem:[%s407_s1 + $0x38] sm:$0xff]  ;;  %v27_v11 = vld [vmem:[%s407_s1 + $0x30] sm:$0xff]  ;;  %v26_v12 = vld [vmem:[%s407_s1 + $0x28] sm:$0xff] }
   0x5   :  { %235 = vmatprep.subr.mxu0 %v280_v0  ;;  %268 = vmatprep.subr.mxu1 %v280_v0  ;;  %v25_v13 = vld [vmem:[%s407_s1 + $0x20] sm:$0xff]  ;;  %v24_v14 = vld [vmem:[%s407_s1 + $0x18] sm:$0xff]  ;;  %v23_v15 = vld [vmem:[%s407_s1 + $0x10] sm:$0xff] }
   0x6   :  { %236 = vmatpush3.msra.mxu0 %v34_v3  ;;  %v22_v16 = vld [vmem:[%s407_s1 + $0x8] sm:$0xff]  ;;  %v21_v17 = vld [vmem:[%s407_s1] sm:$0xff]  ;;  %v118_v19 = vld [vmem:[%s408_s3 + $0x10] sm:$0xff] }
   0x7   :  { %237 = vmatprep.subr.mxu0 %v280_v0  ;;  %v20_v18 = vld [vmem:[%s409_s0] sm:$0xff]  ;;  %269 = vmatpush3.msra.mxu1 %v118_v19  ;;  %v117_v20 = vld [vmem:[%s408_s3 + $0x8] sm:$0xff] }
   0x8   :  { %238 = vmatpush3.msra.mxu0 %v33_v4  ;;  %270 = vmatprep.subr.mxu1 %v280_v0  ;;  %v116_v21 = vld [vmem:[%s408_s3] sm:$0xff] }
   0x9   :  { %239 = vmatprep.subr.mxu0 %v280_v0  ;;  %271 = vmatpush3.msra.mxu1 %v117_v20  ;;  %v206_v22 = vld [vmem:[%s410_s2] ss:$0 sm:$0xff] }
   0xa   :  { %240 = vmatpush3.msra.mxu0 %v32_v6  ;;  %272 = vmatprep.subr.mxu1 %v280_v0  ;;  %v207_v28 = vld [vmem:[%s411_s4] ss:$0 sm:$0xff] }
   0xb   :  { %241 = vmatprep.subr.mxu0 %v280_v0  ;;  %273 = vmatpush3.msra.mxu1 %v116_v21 }
   0xc   :  { %242 = vmatpush3.msra.mxu0 %v31_v7 }
   0xd   :  { %243 = vmatprep.subr.mxu0 %v280_v0 }
   0xe   :  { %244 = vmatpush3.msra.mxu0 %v30_v8 }
   0xf   :  { %245 = vmatprep.subr.mxu0 %v280_v0 }
  0x10   :  { %246 = vmatpush3.msra.mxu0 %v29_v9 }
  0x11   :  { %247 = vmatprep.subr.mxu0 %v280_v0 }
  0x12   :  { %248 = vmatpush3.msra.mxu0 %v28_v10 }
  0x13   :  { %249 = vmatprep.subr.mxu0 %v280_v0 }
  0x14   :  { %250 = vmatpush3.msra.mxu0 %v27_v11 }
  0x15   :  { %251 = vmatprep.subr.mxu0 %v280_v0 }
  0x16   :  { %252 = vmatpush3.msra.mxu0 %v26_v12 }
  0x17   :  { %253 = vmatprep.subr.mxu0 %v280_v0 }
  0x18   :  { %254 = vmatpush3.msra.mxu0 %v25_v13 }
  0x19   :  { %255 = vmatprep.subr.mxu0 %v280_v0 }
  0x1a   :  { %256 = vmatpush3.msra.mxu0 %v24_v14 }
  0x1b   :  { %257 = vmatprep.subr.mxu0 %v280_v0 }
  0x1c   :  { %258 = vmatpush3.msra.mxu0 %v23_v15 }
  0x1d   :  { %259 = vmatprep.subr.mxu0 %v280_v0 }
  0x1e   :  { %260 = vmatpush3.msra.mxu0 %v22_v16 }
  0x1f   :  { %261 = vmatprep.subr.mxu0 %v280_v0 }
  0x20   :  { %262 = vmatpush3.msra.mxu0 %v21_v17 }
  0x21   :  { %264 = vmatmul.mubr.f32.vlgmr.msra.gmra.mxu0 %v20_v18 }
  0xe1   :  { %v110_v23 = vpop.f32.mrf.mxu0 }
  0xe2   :  { %v111_v24 = vadd.f32 %v206_v22, %v110_v23 }
  0xe3   :  { %v265_v25 = vpop.f32.mrf.mxu0 }
  0xe4   :  { %vm114_vm2 = vcmp.ge.f32.partialorder %v111_v24, 0.0 }
  0xe5   :  { %v115_v27 = vsel %vm114_vm2, 1.0, %v282_v26 }
  0xe6   :  { %275 = vmatmul.mubr.msk.f32.vlgmr.msra.gmra.mxu1 %vm127_vm1, %v115_v27 }
 0x1a6   :  { %v197_v29 = vpop.f32.mrf.mxu1 }
 0x1a7   :  { %v198_v30 = vadd.f32 %v207_v28, %v197_v29 }
 0x1a8   :  { %v276_v31 = vpop.f32.mrf.mxu1 }
 0x1a9   :  { %201 = vst [vmem:[%s412_s5] sm:$0xff] %v198_v30 }

</bundles_post_ra>
